<compile_context>
chip_gen: v7x
topology: tpu7x:2x2x1
jax: 0.10.0
libtpu: 0.0.40
codegen_flags: <defaults>
</compile_context>

<pallas_src>
import functools

import jax
import jax.numpy as jnp
from jax.experimental import pallas as pl
from jax.experimental.pallas import tpu as pltpu


def _embedding_kernel(ids_ref, word_hbm, pos_ref, out_ref, w_rows, sems, *,
                      seq_len):
    # ids_ref : (B*S,) int32 in SMEM (scalar prefetch)
    # word_hbm: (V, H) word table, left in HBM (pl.ANY) -> manual DMA gather
    # pos_ref : (TS, H) contiguous position-embedding block for this tile
    # out_ref : (TS, H) output tile (batch dim squeezed via block_shape=None)
    # w_rows  : (TS, H) VMEM scratch holding the gathered word rows
    # sems    : (TS,) DMA semaphores -> TS row copies in flight at once
    b = pl.program_id(0)
    st = pl.program_id(1)
    ts = w_rows.shape[0]
    base = b * seq_len + st * ts

    # Issue all TS row-gather DMAs back-to-back (all in flight), then wait.
    copies = []
    for i in range(ts):
        row = ids_ref[base + i]
        cp = pltpu.make_async_copy(
            word_hbm.at[pl.ds(row, 1), :],
            w_rows.at[pl.ds(i, 1), :],
            sems.at[i],
        )
        cp.start()
        copies.append(cp)
    for cp in copies:
        cp.wait()

    # Single vectorized (TS, H) add + dense store.
    out_ref[...] = (w_rows[...] + pos_ref[...]).astype(out_ref.dtype)
    # TODO(synk): nn.Dropout is identity at inference time; training-mode
    # stochastic dropout (pltpu.prng_*) is intentionally not applied here.


def _pick_tile_seq(seq_len, target=512):
    """Largest multiple-of-8 divisor of seq_len, capped at `target` rows."""
    best = None
    for ts in range(8, min(seq_len, target) + 1, 8):
        if seq_len % ts == 0:
            best = ts
    if best is None:
        raise ValueError("seq_len must be a multiple of 8 for this kernel")
    return best


def embedding_forward(input_ids, word_table, pos_table, *, tile_seq=None):
    """input_ids: (B, S) int -> (B, S, H) embeddings."""
    B, S = input_ids.shape
    V, H = word_table.shape
    P, H2 = pos_table.shape
    assert H == H2, "hidden size mismatch"
    assert S <= P, "sequence length exceeds max_position_embeddings"

    TS = tile_seq if tile_seq is not None else _pick_tile_seq(S)
    assert S % TS == 0

    # Clip ids so a bad token id cannot trigger an OOB HBM DMA.
    ids_flat = jnp.clip(input_ids.reshape(-1), 0, V - 1).astype(jnp.int32)

    kernel = functools.partial(_embedding_kernel, seq_len=S)

    grid_spec = pltpu.PrefetchScalarGridSpec(
        num_scalar_prefetch=1,
        grid=(B, S // TS),
        in_specs=[
            # Word table stays in HBM; rows gathered with manual DMAs.
            pl.BlockSpec(memory_space=pl.ANY),
            # Position rows are sequential -> one contiguous block per tile.
            pl.BlockSpec((TS, H), lambda b, st, ids: (st, 0)),
        ],
        out_specs=pl.BlockSpec((None, TS, H), lambda b, st, ids: (b, st, 0)),
        scratch_shapes=[
            pltpu.VMEM((TS, H), word_table.dtype),
            pltpu.SemaphoreType.DMA((TS,)),
        ],
    )

    return pl.pallas_call(
        kernel,
        out_shape=jax.ShapeDtypeStruct((B, S, H), word_table.dtype),
        grid_spec=grid_spec,
        compiler_params=pltpu.CompilerParams(
            dimension_semantics=("parallel", "parallel")),
    )(ids_flat, word_table, pos_table)


if __name__ == "__main__":
    # Config (small, consistent with the module's __init__)
    vocab_size = 256
    hidden_size = 128
    max_position_embeddings = 64
    B, S = 2, 8

    key = jax.random.PRNGKey(0)
    k_w, k_p, k_ids = jax.random.split(key, 3)

    # nn.Embedding init ~ N(0, 1); padding_idx=0 zeroes row 0 of the word table.
    word_table = jax.random.normal(k_w, (vocab_size, hidden_size), jnp.float32)
    word_table = word_table.at[0].set(0.0)
    pos_table = jax.random.normal(
        k_p, (max_position_embeddings, hidden_size), jnp.float32)

    input_ids = jax.random.randint(k_ids, (B, S), 0, vocab_size, dtype=jnp.int32)

    out = embedding_forward(input_ids, word_table, pos_table)
    out = jax.block_until_ready(out)

    # Pure-JAX reference
    ref = word_table[input_ids] + pos_table[:S][None, :, :]
    assert out.shape == (B, S, hidden_size)
    assert out.dtype == jnp.float32
    assert jnp.allclose(out, ref, atol=1e-6), float(jnp.max(jnp.abs(out - ref)))

    print("KERNEL_OK")
</pallas_src>

<mosaic_0001>
module attributes {stable_mosaic.version = 11 : i64} {
  func.func @_embedding_kernel(%arg0: i32, %arg1: i32, %arg2: memref<16xi32, #tpu.memory_space<smem>>, %arg3: memref<256x128xf32, #tpu.memory_space<any>>, %arg4: memref<8x128xf32, #tpu.memory_space<vmem>>, %arg5: memref<1x8x128xf32, #tpu.memory_space<vmem>>, %arg6: memref<8x128xf32, #tpu.memory_space<vmem>>, %arg7: memref<8x!tpu.dma_semaphore, #tpu.memory_space<semaphore_mem>>) attributes {dimension_semantics = [#tpu.dimension_semantics<parallel>, #tpu.dimension_semantics<parallel>], iteration_bounds = array<i64: 2, 1>, scalar_prefetch = 1 : i64, scratch_operands = 2 : i64, tpu.core_type = #tpu.core_type<tc>, window_params = [{}, {transform_indices = @transform_1, window_bounds = array<i64: 8, 128>}, {transform_indices = @transform_2, window_bounds = array<i64: 1, 8, 128>}]} {
    %c8_i32 = arith.constant 8 : i32
    %0 = arith.muli %arg0, %c8_i32 : i32
    %c8_i32_0 = arith.constant 8 : i32
    %1 = arith.muli %arg1, %c8_i32_0 : i32
    %2 = arith.addi %0, %1 : i32
    %c0_i32 = arith.constant 0 : i32
    %3 = arith.addi %2, %c0_i32 : i32
    %4 = arith.index_cast %3 : i32 to index
    %5 = memref.load %arg2[%4] : memref<16xi32, #tpu.memory_space<smem>>
    %c0_i32_1 = arith.constant 0 : i32
    %c0_i32_2 = arith.constant 0 : i32
    %6 = tpu.memref_slice %arg3[%5, %c0_i32_2] : memref<256x128xf32, #tpu.memory_space<any>> -> memref<1x128xf32, #tpu.memory_space<any>>
    %c0_i32_3 = arith.constant 0 : i32
    %c0_i32_4 = arith.constant 0 : i32
    %7 = tpu.memref_slice %arg6[%c0_i32_3, %c0_i32_4] : memref<8x128xf32, #tpu.memory_space<vmem>> -> memref<1x128xf32, #tpu.memory_space<vmem>>
    %8 = tpu.memref_slice %arg7[%c0_i32_1] : memref<8x!tpu.dma_semaphore, #tpu.memory_space<semaphore_mem>> -> memref<1x!tpu.dma_semaphore, #tpu.memory_space<semaphore_mem>>
    %9 = tpu.memref_squeeze %8 : memref<1x!tpu.dma_semaphore, #tpu.memory_space<semaphore_mem>> -> memref<!tpu.dma_semaphore, #tpu.memory_space<semaphore_mem>>
    tpu.enqueue_dma source(%6 : memref<1x128xf32, #tpu.memory_space<any>>) target(%7 : memref<1x128xf32, #tpu.memory_space<vmem>>) target_semaphore(%9 : memref<!tpu.dma_semaphore, #tpu.memory_space<semaphore_mem>>)
    %c1_i32 = arith.constant 1 : i32
    %10 = arith.addi %2, %c1_i32 : i32
    %11 = arith.index_cast %10 : i32 to index
    %12 = memref.load %arg2[%11] : memref<16xi32, #tpu.memory_space<smem>>
    %c1_i32_5 = arith.constant 1 : i32
    %c0_i32_6 = arith.constant 0 : i32
    %13 = tpu.memref_slice %arg3[%12, %c0_i32_6] : memref<256x128xf32, #tpu.memory_space<any>> -> memref<1x128xf32, #tpu.memory_space<any>>
    %c1_i32_7 = arith.constant 1 : i32
    %c0_i32_8 = arith.constant 0 : i32
    %14 = tpu.memref_slice %arg6[%c1_i32_7, %c0_i32_8] : memref<8x128xf32, #tpu.memory_space<vmem>> -> memref<1x128xf32, #tpu.memory_space<vmem>>
    %15 = tpu.memref_slice %arg7[%c1_i32_5] : memref<8x!tpu.dma_semaphore, #tpu.memory_space<semaphore_mem>> -> memref<1x!tpu.dma_semaphore, #tpu.memory_space<semaphore_mem>>
    %16 = tpu.memref_squeeze %15 : memref<1x!tpu.dma_semaphore, #tpu.memory_space<semaphore_mem>> -> memref<!tpu.dma_semaphore, #tpu.memory_space<semaphore_mem>>
    tpu.enqueue_dma source(%13 : memref<1x128xf32, #tpu.memory_space<any>>) target(%14 : memref<1x128xf32, #tpu.memory_space<vmem>>) target_semaphore(%16 : memref<!tpu.dma_semaphore, #tpu.memory_space<semaphore_mem>>)
    %c2_i32 = arith.constant 2 : i32
    %17 = arith.addi %2, %c2_i32 : i32
    %18 = arith.index_cast %17 : i32 to index
    %19 = memref.load %arg2[%18] : memref<16xi32, #tpu.memory_space<smem>>
    %c2_i32_9 = arith.constant 2 : i32
    %c0_i32_10 = arith.constant 0 : i32
    %20 = tpu.memref_slice %arg3[%19, %c0_i32_10] : memref<256x128xf32, #tpu.memory_space<any>> -> memref<1x128xf32, #tpu.memory_space<any>>
    %c2_i32_11 = arith.constant 2 : i32
    %c0_i32_12 = arith.constant 0 : i32
    %21 = tpu.memref_slice %arg6[%c2_i32_11, %c0_i32_12] : memref<8x128xf32, #tpu.memory_space<vmem>> -> memref<1x128xf32, #tpu.memory_space<vmem>>
    %22 = tpu.memref_slice %arg7[%c2_i32_9] : memref<8x!tpu.dma_semaphore, #tpu.memory_space<semaphore_mem>> -> memref<1x!tpu.dma_semaphore, #tpu.memory_space<semaphore_mem>>
    %23 = tpu.memref_squeeze %22 : memref<1x!tpu.dma_semaphore, #tpu.memory_space<semaphore_mem>> -> memref<!tpu.dma_semaphore, #tpu.memory_space<semaphore_mem>>
    tpu.enqueue_dma source(%20 : memref<1x128xf32, #tpu.memory_space<any>>) target(%21 : memref<1x128xf32, #tpu.memory_space<vmem>>) target_semaphore(%23 : memref<!tpu.dma_semaphore, #tpu.memory_space<semaphore_mem>>)
    %c3_i32 = arith.constant 3 : i32
    %24 = arith.addi %2, %c3_i32 : i32
    %25 = arith.index_cast %24 : i32 to index
    %26 = memref.load %arg2[%25] : memref<16xi32, #tpu.memory_space<smem>>
    %c3_i32_13 = arith.constant 3 : i32
    %c0_i32_14 = arith.constant 0 : i32
    %27 = tpu.memref_slice %arg3[%26, %c0_i32_14] : memref<256x128xf32, #tpu.memory_space<any>> -> memref<1x128xf32, #tpu.memory_space<any>>
    %c3_i32_15 = arith.constant 3 : i32
    %c0_i32_16 = arith.constant 0 : i32
    %28 = tpu.memref_slice %arg6[%c3_i32_15, %c0_i32_16] : memref<8x128xf32, #tpu.memory_space<vmem>> -> memref<1x128xf32, #tpu.memory_space<vmem>>
    %29 = tpu.memref_slice %arg7[%c3_i32_13] : memref<8x!tpu.dma_semaphore, #tpu.memory_space<semaphore_mem>> -> memref<1x!tpu.dma_semaphore, #tpu.memory_space<semaphore_mem>>
    %30 = tpu.memref_squeeze %29 : memref<1x!tpu.dma_semaphore, #tpu.memory_space<semaphore_mem>> -> memref<!tpu.dma_semaphore, #tpu.memory_space<semaphore_mem>>
    tpu.enqueue_dma source(%27 : memref<1x128xf32, #tpu.memory_space<any>>) target(%28 : memref<1x128xf32, #tpu.memory_space<vmem>>) target_semaphore(%30 : memref<!tpu.dma_semaphore, #tpu.memory_space<semaphore_mem>>)
    %c4_i32 = arith.constant 4 : i32
    %31 = arith.addi %2, %c4_i32 : i32
    %32 = arith.index_cast %31 : i32 to index
    %33 = memref.load %arg2[%32] : memref<16xi32, #tpu.memory_space<smem>>
    %c4_i32_17 = arith.constant 4 : i32
    %c0_i32_18 = arith.constant 0 : i32
    %34 = tpu.memref_slice %arg3[%33, %c0_i32_18] : memref<256x128xf32, #tpu.memory_space<any>> -> memref<1x128xf32, #tpu.memory_space<any>>
    %c4_i32_19 = arith.constant 4 : i32
    %c0_i32_20 = arith.constant 0 : i32
    %35 = tpu.memref_slice %arg6[%c4_i32_19, %c0_i32_20] : memref<8x128xf32, #tpu.memory_space<vmem>> -> memref<1x128xf32, #tpu.memory_space<vmem>>
    %36 = tpu.memref_slice %arg7[%c4_i32_17] : memref<8x!tpu.dma_semaphore, #tpu.memory_space<semaphore_mem>> -> memref<1x!tpu.dma_semaphore, #tpu.memory_space<semaphore_mem>>
    %37 = tpu.memref_squeeze %36 : memref<1x!tpu.dma_semaphore, #tpu.memory_space<semaphore_mem>> -> memref<!tpu.dma_semaphore, #tpu.memory_space<semaphore_mem>>
    tpu.enqueue_dma source(%34 : memref<1x128xf32, #tpu.memory_space<any>>) target(%35 : memref<1x128xf32, #tpu.memory_space<vmem>>) target_semaphore(%37 : memref<!tpu.dma_semaphore, #tpu.memory_space<semaphore_mem>>)
    %c5_i32 = arith.constant 5 : i32
    %38 = arith.addi %2, %c5_i32 : i32
    %39 = arith.index_cast %38 : i32 to index
    %40 = memref.load %arg2[%39] : memref<16xi32, #tpu.memory_space<smem>>
    %c5_i32_21 = arith.constant 5 : i32
    %c0_i32_22 = arith.constant 0 : i32
    %41 = tpu.memref_slice %arg3[%40, %c0_i32_22] : memref<256x128xf32, #tpu.memory_space<any>> -> memref<1x128xf32, #tpu.memory_space<any>>
    %c5_i32_23 = arith.constant 5 : i32
    %c0_i32_24 = arith.constant 0 : i32
    %42 = tpu.memref_slice %arg6[%c5_i32_23, %c0_i32_24] : memref<8x128xf32, #tpu.memory_space<vmem>> -> memref<1x128xf32, #tpu.memory_space<vmem>>
    %43 = tpu.memref_slice %arg7[%c5_i32_21] : memref<8x!tpu.dma_semaphore, #tpu.memory_space<semaphore_mem>> -> memref<1x!tpu.dma_semaphore, #tpu.memory_space<semaphore_mem>>
    %44 = tpu.memref_squeeze %43 : memref<1x!tpu.dma_semaphore, #tpu.memory_space<semaphore_mem>> -> memref<!tpu.dma_semaphore, #tpu.memory_space<semaphore_mem>>
    tpu.enqueue_dma source(%41 : memref<1x128xf32, #tpu.memory_space<any>>) target(%42 : memref<1x128xf32, #tpu.memory_space<vmem>>) target_semaphore(%44 : memref<!tpu.dma_semaphore, #tpu.memory_space<semaphore_mem>>)
    %c6_i32 = arith.constant 6 : i32
    %45 = arith.addi %2, %c6_i32 : i32
    %46 = arith.index_cast %45 : i32 to index
    %47 = memref.load %arg2[%46] : memref<16xi32, #tpu.memory_space<smem>>
    %c6_i32_25 = arith.constant 6 : i32
    %c0_i32_26 = arith.constant 0 : i32
    %48 = tpu.memref_slice %arg3[%47, %c0_i32_26] : memref<256x128xf32, #tpu.memory_space<any>> -> memref<1x128xf32, #tpu.memory_space<any>>
    %c6_i32_27 = arith.constant 6 : i32
    %c0_i32_28 = arith.constant 0 : i32
    %49 = tpu.memref_slice %arg6[%c6_i32_27, %c0_i32_28] : memref<8x128xf32, #tpu.memory_space<vmem>> -> memref<1x128xf32, #tpu.memory_space<vmem>>
    %50 = tpu.memref_slice %arg7[%c6_i32_25] : memref<8x!tpu.dma_semaphore, #tpu.memory_space<semaphore_mem>> -> memref<1x!tpu.dma_semaphore, #tpu.memory_space<semaphore_mem>>
    %51 = tpu.memref_squeeze %50 : memref<1x!tpu.dma_semaphore, #tpu.memory_space<semaphore_mem>> -> memref<!tpu.dma_semaphore, #tpu.memory_space<semaphore_mem>>
    tpu.enqueue_dma source(%48 : memref<1x128xf32, #tpu.memory_space<any>>) target(%49 : memref<1x128xf32, #tpu.memory_space<vmem>>) target_semaphore(%51 : memref<!tpu.dma_semaphore, #tpu.memory_space<semaphore_mem>>)
    %c7_i32 = arith.constant 7 : i32
    %52 = arith.addi %2, %c7_i32 : i32
    %53 = arith.index_cast %52 : i32 to index
    %54 = memref.load %arg2[%53] : memref<16xi32, #tpu.memory_space<smem>>
    %c7_i32_29 = arith.constant 7 : i32
    %c0_i32_30 = arith.constant 0 : i32
    %55 = tpu.memref_slice %arg3[%54, %c0_i32_30] : memref<256x128xf32, #tpu.memory_space<any>> -> memref<1x128xf32, #tpu.memory_space<any>>
    %c7_i32_31 = arith.constant 7 : i32
    %c0_i32_32 = arith.constant 0 : i32
    %56 = tpu.memref_slice %arg6[%c7_i32_31, %c0_i32_32] : memref<8x128xf32, #tpu.memory_space<vmem>> -> memref<1x128xf32, #tpu.memory_space<vmem>>
    %57 = tpu.memref_slice %arg7[%c7_i32_29] : memref<8x!tpu.dma_semaphore, #tpu.memory_space<semaphore_mem>> -> memref<1x!tpu.dma_semaphore, #tpu.memory_space<semaphore_mem>>
    %58 = tpu.memref_squeeze %57 : memref<1x!tpu.dma_semaphore, #tpu.memory_space<semaphore_mem>> -> memref<!tpu.dma_semaphore, #tpu.memory_space<semaphore_mem>>
    tpu.enqueue_dma source(%55 : memref<1x128xf32, #tpu.memory_space<any>>) target(%56 : memref<1x128xf32, #tpu.memory_space<vmem>>) target_semaphore(%58 : memref<!tpu.dma_semaphore, #tpu.memory_space<semaphore_mem>>)
    %c0_i32_33 = arith.constant 0 : i32
    %c0_i32_34 = arith.constant 0 : i32
    %59 = tpu.memref_slice %arg3[%5, %c0_i32_34] : memref<256x128xf32, #tpu.memory_space<any>> -> memref<1x128xf32, #tpu.memory_space<any>>
    %c0_i32_35 = arith.constant 0 : i32
    %c0_i32_36 = arith.constant 0 : i32
    %60 = tpu.memref_slice %arg6[%c0_i32_35, %c0_i32_36] : memref<8x128xf32, #tpu.memory_space<vmem>> -> memref<1x128xf32, #tpu.memory_space<vmem>>
    %61 = tpu.memref_slice %arg7[%c0_i32_33] : memref<8x!tpu.dma_semaphore, #tpu.memory_space<semaphore_mem>> -> memref<1x!tpu.dma_semaphore, #tpu.memory_space<semaphore_mem>>
    %62 = tpu.memref_squeeze %61 : memref<1x!tpu.dma_semaphore, #tpu.memory_space<semaphore_mem>> -> memref<!tpu.dma_semaphore, #tpu.memory_space<semaphore_mem>>
    tpu.wait_dma2 semaphore(%62 : memref<!tpu.dma_semaphore, #tpu.memory_space<semaphore_mem>>) src(%59 : memref<1x128xf32, #tpu.memory_space<any>>) dst(%60 : memref<1x128xf32, #tpu.memory_space<vmem>>)
    %c1_i32_37 = arith.constant 1 : i32
    %c0_i32_38 = arith.constant 0 : i32
    %63 = tpu.memref_slice %arg3[%12, %c0_i32_38] : memref<256x128xf32, #tpu.memory_space<any>> -> memref<1x128xf32, #tpu.memory_space<any>>
    %c1_i32_39 = arith.constant 1 : i32
    %c0_i32_40 = arith.constant 0 : i32
    %64 = tpu.memref_slice %arg6[%c1_i32_39, %c0_i32_40] : memref<8x128xf32, #tpu.memory_space<vmem>> -> memref<1x128xf32, #tpu.memory_space<vmem>>
    %65 = tpu.memref_slice %arg7[%c1_i32_37] : memref<8x!tpu.dma_semaphore, #tpu.memory_space<semaphore_mem>> -> memref<1x!tpu.dma_semaphore, #tpu.memory_space<semaphore_mem>>
    %66 = tpu.memref_squeeze %65 : memref<1x!tpu.dma_semaphore, #tpu.memory_space<semaphore_mem>> -> memref<!tpu.dma_semaphore, #tpu.memory_space<semaphore_mem>>
    tpu.wait_dma2 semaphore(%66 : memref<!tpu.dma_semaphore, #tpu.memory_space<semaphore_mem>>) src(%63 : memref<1x128xf32, #tpu.memory_space<any>>) dst(%64 : memref<1x128xf32, #tpu.memory_space<vmem>>)
    %c2_i32_41 = arith.constant 2 : i32
    %c0_i32_42 = arith.constant 0 : i32
    %67 = tpu.memref_slice %arg3[%19, %c0_i32_42] : memref<256x128xf32, #tpu.memory_space<any>> -> memref<1x128xf32, #tpu.memory_space<any>>
    %c2_i32_43 = arith.constant 2 : i32
    %c0_i32_44 = arith.constant 0 : i32
    %68 = tpu.memref_slice %arg6[%c2_i32_43, %c0_i32_44] : memref<8x128xf32, #tpu.memory_space<vmem>> -> memref<1x128xf32, #tpu.memory_space<vmem>>
    %69 = tpu.memref_slice %arg7[%c2_i32_41] : memref<8x!tpu.dma_semaphore, #tpu.memory_space<semaphore_mem>> -> memref<1x!tpu.dma_semaphore, #tpu.memory_space<semaphore_mem>>
    %70 = tpu.memref_squeeze %69 : memref<1x!tpu.dma_semaphore, #tpu.memory_space<semaphore_mem>> -> memref<!tpu.dma_semaphore, #tpu.memory_space<semaphore_mem>>
    tpu.wait_dma2 semaphore(%70 : memref<!tpu.dma_semaphore, #tpu.memory_space<semaphore_mem>>) src(%67 : memref<1x128xf32, #tpu.memory_space<any>>) dst(%68 : memref<1x128xf32, #tpu.memory_space<vmem>>)
    %c3_i32_45 = arith.constant 3 : i32
    %c0_i32_46 = arith.constant 0 : i32
    %71 = tpu.memref_slice %arg3[%26, %c0_i32_46] : memref<256x128xf32, #tpu.memory_space<any>> -> memref<1x128xf32, #tpu.memory_space<any>>
    %c3_i32_47 = arith.constant 3 : i32
    %c0_i32_48 = arith.constant 0 : i32
    %72 = tpu.memref_slice %arg6[%c3_i32_47, %c0_i32_48] : memref<8x128xf32, #tpu.memory_space<vmem>> -> memref<1x128xf32, #tpu.memory_space<vmem>>
    %73 = tpu.memref_slice %arg7[%c3_i32_45] : memref<8x!tpu.dma_semaphore, #tpu.memory_space<semaphore_mem>> -> memref<1x!tpu.dma_semaphore, #tpu.memory_space<semaphore_mem>>
    %74 = tpu.memref_squeeze %73 : memref<1x!tpu.dma_semaphore, #tpu.memory_space<semaphore_mem>> -> memref<!tpu.dma_semaphore, #tpu.memory_space<semaphore_mem>>
    tpu.wait_dma2 semaphore(%74 : memref<!tpu.dma_semaphore, #tpu.memory_space<semaphore_mem>>) src(%71 : memref<1x128xf32, #tpu.memory_space<any>>) dst(%72 : memref<1x128xf32, #tpu.memory_space<vmem>>)
    %c4_i32_49 = arith.constant 4 : i32
    %c0_i32_50 = arith.constant 0 : i32
    %75 = tpu.memref_slice %arg3[%33, %c0_i32_50] : memref<256x128xf32, #tpu.memory_space<any>> -> memref<1x128xf32, #tpu.memory_space<any>>
    %c4_i32_51 = arith.constant 4 : i32
    %c0_i32_52 = arith.constant 0 : i32
    %76 = tpu.memref_slice %arg6[%c4_i32_51, %c0_i32_52] : memref<8x128xf32, #tpu.memory_space<vmem>> -> memref<1x128xf32, #tpu.memory_space<vmem>>
    %77 = tpu.memref_slice %arg7[%c4_i32_49] : memref<8x!tpu.dma_semaphore, #tpu.memory_space<semaphore_mem>> -> memref<1x!tpu.dma_semaphore, #tpu.memory_space<semaphore_mem>>
    %78 = tpu.memref_squeeze %77 : memref<1x!tpu.dma_semaphore, #tpu.memory_space<semaphore_mem>> -> memref<!tpu.dma_semaphore, #tpu.memory_space<semaphore_mem>>
    tpu.wait_dma2 semaphore(%78 : memref<!tpu.dma_semaphore, #tpu.memory_space<semaphore_mem>>) src(%75 : memref<1x128xf32, #tpu.memory_space<any>>) dst(%76 : memref<1x128xf32, #tpu.memory_space<vmem>>)
    %c5_i32_53 = arith.constant 5 : i32
    %c0_i32_54 = arith.constant 0 : i32
    %79 = tpu.memref_slice %arg3[%40, %c0_i32_54] : memref<256x128xf32, #tpu.memory_space<any>> -> memref<1x128xf32, #tpu.memory_space<any>>
    %c5_i32_55 = arith.constant 5 : i32
    %c0_i32_56 = arith.constant 0 : i32
    %80 = tpu.memref_slice %arg6[%c5_i32_55, %c0_i32_56] : memref<8x128xf32, #tpu.memory_space<vmem>> -> memref<1x128xf32, #tpu.memory_space<vmem>>
    %81 = tpu.memref_slice %arg7[%c5_i32_53] : memref<8x!tpu.dma_semaphore, #tpu.memory_space<semaphore_mem>> -> memref<1x!tpu.dma_semaphore, #tpu.memory_space<semaphore_mem>>
    %82 = tpu.memref_squeeze %81 : memref<1x!tpu.dma_semaphore, #tpu.memory_space<semaphore_mem>> -> memref<!tpu.dma_semaphore, #tpu.memory_space<semaphore_mem>>
    tpu.wait_dma2 semaphore(%82 : memref<!tpu.dma_semaphore, #tpu.memory_space<semaphore_mem>>) src(%79 : memref<1x128xf32, #tpu.memory_space<any>>) dst(%80 : memref<1x128xf32, #tpu.memory_space<vmem>>)
    %c6_i32_57 = arith.constant 6 : i32
    %c0_i32_58 = arith.constant 0 : i32
    %83 = tpu.memref_slice %arg3[%47, %c0_i32_58] : memref<256x128xf32, #tpu.memory_space<any>> -> memref<1x128xf32, #tpu.memory_space<any>>
    %c6_i32_59 = arith.constant 6 : i32
    %c0_i32_60 = arith.constant 0 : i32
    %84 = tpu.memref_slice %arg6[%c6_i32_59, %c0_i32_60] : memref<8x128xf32, #tpu.memory_space<vmem>> -> memref<1x128xf32, #tpu.memory_space<vmem>>
    %85 = tpu.memref_slice %arg7[%c6_i32_57] : memref<8x!tpu.dma_semaphore, #tpu.memory_space<semaphore_mem>> -> memref<1x!tpu.dma_semaphore, #tpu.memory_space<semaphore_mem>>
    %86 = tpu.memref_squeeze %85 : memref<1x!tpu.dma_semaphore, #tpu.memory_space<semaphore_mem>> -> memref<!tpu.dma_semaphore, #tpu.memory_space<semaphore_mem>>
    tpu.wait_dma2 semaphore(%86 : memref<!tpu.dma_semaphore, #tpu.memory_space<semaphore_mem>>) src(%83 : memref<1x128xf32, #tpu.memory_space<any>>) dst(%84 : memref<1x128xf32, #tpu.memory_space<vmem>>)
    %c7_i32_61 = arith.constant 7 : i32
    %c0_i32_62 = arith.constant 0 : i32
    %87 = tpu.memref_slice %arg3[%54, %c0_i32_62] : memref<256x128xf32, #tpu.memory_space<any>> -> memref<1x128xf32, #tpu.memory_space<any>>
    %c7_i32_63 = arith.constant 7 : i32
    %c0_i32_64 = arith.constant 0 : i32
    %88 = tpu.memref_slice %arg6[%c7_i32_63, %c0_i32_64] : memref<8x128xf32, #tpu.memory_space<vmem>> -> memref<1x128xf32, #tpu.memory_space<vmem>>
    %89 = tpu.memref_slice %arg7[%c7_i32_61] : memref<8x!tpu.dma_semaphore, #tpu.memory_space<semaphore_mem>> -> memref<1x!tpu.dma_semaphore, #tpu.memory_space<semaphore_mem>>
    %90 = tpu.memref_squeeze %89 : memref<1x!tpu.dma_semaphore, #tpu.memory_space<semaphore_mem>> -> memref<!tpu.dma_semaphore, #tpu.memory_space<semaphore_mem>>
    tpu.wait_dma2 semaphore(%90 : memref<!tpu.dma_semaphore, #tpu.memory_space<semaphore_mem>>) src(%87 : memref<1x128xf32, #tpu.memory_space<any>>) dst(%88 : memref<1x128xf32, #tpu.memory_space<vmem>>)
    %c0 = arith.constant 0 : index
    %c0_65 = arith.constant 0 : index
    %91 = vector.load %arg6[%c0, %c0_65] : memref<8x128xf32, #tpu.memory_space<vmem>>, vector<8x128xf32>
    %c0_66 = arith.constant 0 : index
    %c0_67 = arith.constant 0 : index
    %92 = vector.load %arg4[%c0_66, %c0_67] : memref<8x128xf32, #tpu.memory_space<vmem>>, vector<8x128xf32>
    %93 = arith.addf %91, %92 : vector<8x128xf32>
    %c0_68 = arith.constant 0 : index
    %c0_69 = arith.constant 0 : index
    %c0_70 = arith.constant 0 : index
    %94 = vector.load %arg5[%c0_68, %c0_69, %c0_70] : memref<1x8x128xf32, #tpu.memory_space<vmem>>, vector<1x8x128xf32>
    %95 = vector.shape_cast %94 : vector<1x8x128xf32> to vector<8x128xf32>
    %96 = vector.shape_cast %93 : vector<8x128xf32> to vector<1x8x128xf32>
    tpu.vector_store %arg5[%c0_68, %c0_69, %c0_70], %96 {strides = array<i32>} : memref<1x8x128xf32, #tpu.memory_space<vmem>>, vector<1x8x128xf32>,
    return
  }
  func.func @transform_1(%arg0: i32, %arg1: i32, %arg2: memref<16xi32, #tpu.memory_space<smem>>) -> (i32, i32) {
    %c0_i32 = arith.constant 0 : i32
    %c0_i32_0 = arith.constant 0 : i32
    return %arg1, %c0_i32 : i32, i32
  }
  func.func @transform_2(%arg0: i32, %arg1: i32, %arg2: memref<16xi32, #tpu.memory_space<smem>>) -> (i32, i32, i32) {
    %c0_i32 = arith.constant 0 : i32
    %c0_i32_0 = arith.constant 0 : i32
    return %arg0, %arg1, %c0_i32 : i32, i32, i32
  }
}

</mosaic_0001>

<bundles_post_ra>
// kernel: tpu_custom_call.1
= control target key start
LH: loop header
LB: loop body
LE: loop exit
PB: predicated region body
PF: predicated region fallthrough
CT: control target
= control target key end

     0   :  { %s1208_s0 = inlined_call_operand.hbm [shape: s32[16], index: 0, kind: input, shape index: {}]   ;;  %s1209_s1 = inlined_call_operand.hbm [shape: f32[256,128], index: 1, kind: input, shape index: {}]   ;;  %s1210_s2 = inlined_call_operand.hbm [shape: f32[64,128], index: 2, kind: input, shape index: {}]   ;;  %s1211_s3 = inlined_call_operand.hbm [shape: f32[2,8,128], index: 3, kind: output, shape index: {}]  }
   0x1   :  { %1219 = sst [smem:[#allocation41_spill]] %s1210_s2  ;;  %s551_s14 = scalar_lea.hbm %s1208_s0, 16 }
   0x2   :  { %p552_p0 = scmp.ne.s32.totalorder %s1208_s0, %s551_s14  ;;  %p555_p1 = scmp.lt.u32.totalorder %s551_s14, %s1208_s0 }
   0x4   :  { %p557_p2 = pnand %p555_p1, %p552_p0 }
   0x6   :  { %560 = shalt.err (!%p557_p2)  }
   0x7   :  { %s883_s19 = smov [#allocation5]  }
   0x8   :  { %9 = dma.hbm_to_smem %s1208_s0, 16, %s883_s19, [#allocation4] }
   0x9   :  { %833 = dma.done.wait [#allocation4], 16 }
   0xa   :  { %834 = vsyncadd [#allocation4], 4294967280 }
   0xb   :  { %11 = sfence }
   0xc   :  { %12 = vsyncpa [#allocation7], 0 }
   0xd   :  { %13 = vsyncpa [#allocation8], 0 }
   0xe   :  { %15 = vsyncpa [#allocation8 + $0x1], 0  ;;  %s926_s22 = smov 0   ;;  %s928_s23 = smov 0  }
   0xf   :  { %s930_s24 = smov 0   ;;  %s932_s25 = smov 0  }
  0x10   :  { %s934_s26 = smov 0   ;;  %s936_s27 = smov 0  }
  0x11 LB: > { %1220 = sst [smem:[#allocation39_spill]] %s877_s26  ;;  %s448_s0 = sadd.s32 4294967295, %s881_s27   ;;  %s881_s27 = sphi %s936_s27, %s21_s27   ;;  %s877_s26 = sphi %s934_s26, %s1234_s26   ;;  %s873_s25 = sphi %s932_s25, %s1233_s25   ;;  %s869_s24 = sphi %s930_s24, %s1237_s24   ;;  %s865_s23 = sphi %s928_s23, %s1236_s23   ;;  %s861_s22 = sphi %s926_s22, %s1235_s22  }
  0x12   : > { %s449_s28 = sadd.s32 4294967294, %s881_s27   ;;  %s33_s29 = sadd.s32 1, %s877_s26 }
  0x13   : > { %s68_s30 = sadd.s32 1, %s869_s24  ;;  %p35_p3 = scmp.ge.s32.totalorder %s33_s29, 2 }
  0x14   : > { %p78_p4 = scmp.ne.s32.totalorder %s869_s24, %s865_s23  ;;  %p79_p5 = scmp.eq.s32.totalorder %s448_s0, 1 }
  0x15   : > { %p84_p6 = scmp.ne.s32.totalorder %s865_s23, %s861_s22  ;;  %s1239_s29 = smov (%p35_p3, %s33_s29), 0 }
  0x16   : > { %1221 = sst [smem:[#allocation40_spill]] %s1239_s29  ;;  %p966_p7 = por %p79_p5, %p78_p4 }
  0x17   : > { %p85_p8 = scmp.eq.s32.totalorder %s449_s28, 1  ;;  %s63_s5 = ssub.s32 %s877_s26, %s1239_s29 }
  0x18   : > { %s1222_s4 = scalar_select %p966_p7, 1, 0 }
  0x19   : > { %p450_p9 = scmp.ge.s32.totalorder %s881_s27, 1  ;;  %p66_p10 = scmp.eq.s32.totalorder %s63_s5, 0 }
  0x1a   : > { %p973_p11 = por %p85_p8, %p84_p6  ;;  %p92_p12 = scmp.lt.s32.totalorder %s881_s27, 3 }
  0x1b   : > { %s979_s7 = scalar_select %p66_p10, %s869_s24, %s68_s30  }
  0x1c   : > { %s1223_s6 = scalar_select %p973_p11, 1, 0 }
  0x1d   : > { %p981_p13 = pnand %p450_p9, %p92_p12  ;;  %p985_p0 = scmp.eq.s32.totalorder %s448_s0, 0 }
  0x1e   : > { %s884_s10 = smov [#allocation6]   ;;  %s1227_s2 = sld [smem:[#allocation41_spill]] }
  0x1f   : > { %s1224_s8 = scalar_select %p981_p13, 1, 0 }
  0x20   : > { %s1225_s9 = scalar_select %p985_p0, 1, 0 }
  0x21   : > { %p482_p1 = pneg %p981_p13  ;;  %s107_s11 = sshll.u32 %s884_s10, 4  ;;  %s108_s11 = int_to_ptr.vmem [resolvable:$true] %s107_s11 }
  0x23   : > { %p993_p2 = pnand %p985_p0, %p482_p1 }
  0x24   : > { %s561_s15 = scalar_lea.hbm %s1227_s2, 128  ;;  %s566_s20 = scalar_lea.hbm %s1227_s2, 1024 }
  0x25   : > { %p562_p3 = scmp.ne.s32.totalorder %s1227_s2, %s561_s15  ;;  %p563_p4 = pneg %p993_p2 }
  0x26   : > { %p567_p8 = scmp.lt.u32.totalorder %s566_s20, %s561_s15  ;;  %p568_p9 = scmp.lt.u32.totalorder %s561_s15, %s1227_s2 }
  0x27   : > { %p564_p5 = pnand %p563_p4, %p562_p3 }
  0x28   : > { %p569_p10 = por %p568_p9, %p567_p8 }
  0x29   : > { %p565_p6 = pneg %p564_p5 }
  0x2b   : > { %p570_p12 = pnand %p569_p10, %p565_p6 }
  0x2d   : > { %573 = shalt.err (!%p570_p12)
}
  0x2e   : > { %s574_s28 = scalar_lea.vmem %s108_s11, 128  ;;  %p582_p0 = scmp.lt.s32.totalorder %s108_s11, %s108_s11 }
  0x2f   : > { %p575_p1 = scmp.ne.s32.totalorder %s108_s11, %s574_s28  ;;  %p583_p13 = scmp.lt.s32.totalorder %s574_s28, %s574_s28 }
  0x31   : > { %p577_p11 = pnand %p575_p1, %p563_p4  ;;  %p584_p3 = por %p583_p13, %p582_p0 }
  0x33   : > { %p578_p7 = pneg %p577_p11 }
  0x35   : > { %p585_p5 = pnand %p584_p3, %p578_p7 }
  0x37   : > { %588 = shalt.err (!%p585_p5)
}
  0x38   : > { %485 = dma.hbm_to_vmem [thread:$0]  (!%p993_p2), %s1227_s2, 128, %s108_s11, [#allocation7]  }
  0x39   : > { %p1228_p8 = scmp.ne.s32.totalorder %s1224_s8, 0 }
  0x3a   : > { %p1229_p6 = scmp.ne.s32.totalorder (!%p1228_p8), %s1225_s9, 0 }
  0x3b   : > { %120 = sbr.rel (%p1228_p8) target bundleno = 290 (0x122), region = 24 }
  0x42   : > { %836 = dma.done.wait (%p1229_p6), [#allocation7], 128  }
  0x43   : > { %838 = vsyncadd (%p1229_p6), [#allocation7], 4294967168  ;;  %s1216_s10 = sand.u32 1, %s865_s23   ;;  %s1024_s13 = sshll.u32 %s873_s25, 3 }
  0x44   : > { %s1028_s11 = sshll.u32 %s1216_s10, 3  ;;  %s138_s8 = sld [smem:[#allocation5 + %s1024_s13]] }
  0x45   : > { %s885_s12 = smov [#allocation2]   ;;  %s152_s15 = sadd.s32 1, %s1024_s13 }
  0x46   : > { %s148_s14 = sshll.u32 %s885_s12, 4  ;;  %s1034_s9 = sld [smem:[#allocation5 + %s152_s15]]  ;;  %s1032_s14 = int_to_ptr.vmem [resolvable:$true] %s148_s14 }
  0x47   : > { %s169_s16 = sadd.s32 2, %s1024_s13  ;;  %s886_s17 = smov [#allocation2 + $0x1]  }
  0x48   : > { %s165_s18 = sshll.u32 %s886_s17, 4  ;;  %s1037_s19 = sld [smem:[#allocation5 + %s169_s16]]  ;;  %s1039_s18 = int_to_ptr.vmem [resolvable:$true] %s165_s18 }
  0x49   : > { %s1047_s10 = scalar_lea.hbm %s1209_s1, 4096 }
  0x4a   : > { %s456_s20 = sshll.u32 %s138_s8, 4 }
  0x4b   : > { %s140_s28 = scalar_lea.hbm %s1209_s1, %s456_s20 }
  0x4c   : > { %s589_s30 = scalar_lea.hbm %s140_s28, 16  ;;  %p592_p11 = scmp.lt.u32.totalorder %s140_s28, %s1209_s1 }
  0x4d   : > { %p590_p7 = scmp.ne.s32.totalorder %s140_s28, %s589_s30  ;;  %p593_p13 = scmp.lt.u32.totalorder %s1047_s10, %s589_s30 }
  0x4e   : > { %p595_p2 = scmp.lt.u32.totalorder %s589_s30, %s140_s28 }
  0x4f   : > { %p594_p0 = por %p593_p13, %p592_p11 }
  0x51   : > { %p596_p4 = por %p595_p2, %p594_p0 }
  0x53   : > { %p597_p9 = pnand %p596_p4, %p590_p7 }
  0x55   : > { %600 = shalt.err (!%p597_p9)  }
  0x56   : > { %s601_s8 = scalar_lea.vmem %s1032_s14, 16  ;;  %s1056_s16 = scalar_lea.vmem %s1032_s14, 128 }
  0x57   : > { %p602_p10 = scmp.ne.s32.totalorder %s1032_s14, %s601_s8  ;;  %p606_p12 = scmp.lt.s32.totalorder %s1032_s14, %s1032_s14 }
  0x58   : > { %p607_p1 = scmp.lt.s32.totalorder %s1056_s16, %s601_s8 }
  0x5a   : > { %p608_p3 = por %p607_p1, %p606_p12 }
  0x5c   : > { %p609_p5 = pnand %p608_p3, %p602_p10 }
  0x5e   : > { %612 = shalt.err (!%p609_p5)  }
  0x5f   : > { %151 = dma.hbm_to_vmem [thread:$0]  %s140_s28, 16, %s1032_s14, [#allocation3] }
  0x60   : > { %s457_s2 = sshll.u32 %s1034_s9, 4  ;;  %s887_s17 = smov [#allocation2 + $0x2]  }
  0x61   : > { %s182_s20 = sshll.u32 %s887_s17, 4  ;;  %s155_s30 = scalar_lea.hbm %s1209_s1, %s457_s2  ;;  %s1066_s20 = int_to_ptr.vmem [resolvable:$true] %s182_s20 }
  0x62   : > { %s613_s5 = scalar_lea.hbm %s155_s30, 16  ;;  %p616_p6 = scmp.lt.u32.totalorder %s155_s30, %s1209_s1 }
  0x63   : > { %p614_p8 = scmp.ne.s32.totalorder %s155_s30, %s613_s5  ;;  %p617_p7 = scmp.lt.u32.totalorder %s1047_s10, %s613_s5 }
  0x64   : > { %p619_p13 = scmp.lt.u32.totalorder %s613_s5, %s155_s30 }
  0x65   : > { %p618_p11 = por %p617_p7, %p616_p6 }
  0x67   : > { %p620_p0 = por %p619_p13, %p618_p11 }
  0x69   : > { %p621_p2 = pnand %p620_p0, %p614_p8 }
  0x6b   : > { %624 = shalt.err (!%p621_p2)  }
  0x6c   : > { %s625_s9 = scalar_lea.vmem %s1039_s18, 16  ;;  %p630_p9 = scmp.lt.s32.totalorder %s1039_s18, %s1032_s14 }
  0x6d   : > { %p626_p4 = scmp.ne.s32.totalorder %s1039_s18, %s625_s9  ;;  %p631_p10 = scmp.lt.s32.totalorder %s1056_s16, %s625_s9 }
  0x6f   : > { %p632_p12 = por %p631_p10, %p630_p9 }
  0x71   : > { %p633_p1 = pnand %p632_p12, %p626_p4 }
  0x73   : > { %636 = shalt.err (!%p633_p1)  }
  0x74   : > { %168 = dma.hbm_to_vmem [thread:$0]  %s155_s30, 16, %s1039_s18, [#allocation3 + $0x1] }
  0x75   : > { %s458_s28 = sshll.u32 %s1037_s19, 4  ;;  %s186_s8 = sadd.s32 3, %s1024_s13 }
  0x76   : > { %s172_s21 = scalar_lea.hbm %s1209_s1, %s458_s28  ;;  %s1083_s0 = sld [smem:[#allocation5 + %s186_s8]] }
  0x77   : > { %s637_s5 = scalar_lea.hbm %s172_s21, 16  ;;  %p640_p5 = scmp.lt.u32.totalorder %s172_s21, %s1209_s1 }
  0x78   : > { %p638_p3 = scmp.ne.s32.totalorder %s172_s21, %s637_s5  ;;  %p641_p8 = scmp.lt.u32.totalorder %s1047_s10, %s637_s5 }
  0x79   : > { %p643_p7 = scmp.lt.u32.totalorder %s637_s5, %s172_s21 }
  0x7a   : > { %p642_p6 = por %p641_p8, %p640_p5 }
  0x7c   : > { %p644_p11 = por %p643_p7, %p642_p6 }
  0x7e   : > { %p645_p13 = pnand %p644_p11, %p638_p3 }
  0x80   : > { %648 = shalt.err (!%p645_p13)  }
  0x81   : > { %s649_s18 = scalar_lea.vmem %s1066_s20, 16  ;;  %p654_p2 = scmp.lt.s32.totalorder %s1066_s20, %s1032_s14 }
  0x82   : > { %p650_p0 = scmp.ne.s32.totalorder %s1066_s20, %s649_s18  ;;  %p655_p4 = scmp.lt.s32.totalorder %s1056_s16, %s649_s18 }
  0x84   : > { %p656_p9 = por %p655_p4, %p654_p2 }
  0x86   : > { %p657_p10 = pnand %p656_p9, %p650_p0 }
  0x88   : > { %660 = shalt.err (!%p657_p10)  }
  0x89   : > { %185 = dma.hbm_to_vmem [thread:$0]  %s172_s21, 16, %s1066_s20, [#allocation3 + $0x2] }
  0x8a   : > { %s203_s19 = sadd.s32 4, %s1024_s13  ;;  %s888_s30 = smov [#allocation2 + $0x3]  }
  0x8b   : > { %s199_s9 = sshll.u32 %s888_s30, 4  ;;  %s204_s28 = sld [smem:[#allocation5 + %s203_s19]]  ;;  %s200_s9 = int_to_ptr.vmem [resolvable:$true] %s199_s9 }
  0x8c   : > { %s889_s8 = smov [#allocation2 + $0x4]   ;;  %s220_s17 = sadd.s32 5, %s1024_s13 }
  0x8d   : > { %s216_s2 = sshll.u32 %s889_s8, 4  ;;  %s459_s5 = sshll.u32 %s1083_s0, 4  ;;  %s1098_s2 = int_to_ptr.vmem [resolvable:$true] %s216_s2 }
  0x8e   : > { %s189_s18 = scalar_lea.hbm %s1209_s1, %s459_s5  ;;  %s1103_s29 = sld [smem:[#allocation5 + %s220_s17]] }
  0x8f   : > { %s661_s26 = scalar_lea.hbm %s189_s18, 16  ;;  %p664_p1 = scmp.lt.u32.totalorder %s189_s18, %s1209_s1 }
  0x90   : > { %p662_p12 = scmp.ne.s32.totalorder %s189_s18, %s661_s26  ;;  %p665_p3 = scmp.lt.u32.totalorder %s1047_s10, %s661_s26 }
  0x91   : > { %p667_p8 = scmp.lt.u32.totalorder %s661_s26, %s189_s18 }
  0x92   : > { %p666_p5 = por %p665_p3, %p664_p1 }
  0x94   : > { %p668_p6 = por %p667_p8, %p666_p5 }
  0x96   : > { %p669_p7 = pnand %p668_p6, %p662_p12 }
  0x98   : > { %672 = shalt.err (!%p669_p7)  }
  0x99   : > { %s673_s0 = scalar_lea.vmem %s200_s9, 16  ;;  %p678_p13 = scmp.lt.s32.totalorder %s200_s9, %s1032_s14 }
  0x9a   : > { %p674_p11 = scmp.ne.s32.totalorder %s200_s9, %s673_s0  ;;  %p679_p0 = scmp.lt.s32.totalorder %s1056_s16, %s673_s0 }
  0x9c   : > { %p680_p2 = por %p679_p0, %p678_p13 }
  0x9e   : > { %p681_p4 = pnand %p680_p2, %p674_p11 }
  0xa0   : > { %684 = shalt.err (!%p681_p4)  }
  0xa1   : > { %202 = dma.hbm_to_vmem [thread:$0]  %s189_s18, 16, %s200_s9, [#allocation3 + $0x3] }
  0xa2   : > { %s460_s19 = sshll.u32 %s204_s28, 4  ;;  %s890_s26 = smov [#allocation2 + $0x5]  }
  0xa3   : > { %s206_s17 = scalar_lea.hbm %s1209_s1, %s460_s19  ;;  %s233_s5 = sshll.u32 %s890_s26, 4  ;;  %s234_s5 = int_to_ptr.vmem [resolvable:$true] %s233_s5 }
  0xa4   : > { %s685_s12 = scalar_lea.hbm %s206_s17, 16  ;;  %p688_p10 = scmp.lt.u32.totalorder %s206_s17, %s1209_s1 }
  0xa5   : > { %p686_p9 = scmp.ne.s32.totalorder %s206_s17, %s685_s12  ;;  %p689_p12 = scmp.lt.u32.totalorder %s1047_s10, %s685_s12 }
  0xa6   : > { %p691_p3 = scmp.lt.u32.totalorder %s685_s12, %s206_s17 }
  0xa7   : > { %p690_p1 = por %p689_p12, %p688_p10 }
  0xa9   : > { %p692_p5 = por %p691_p3, %p690_p1 }
  0xab   : > { %p693_p8 = pnand %p692_p5, %p686_p9 }
  0xad   : > { %696 = shalt.err (!%p693_p8)  }
  0xae   : > { %s697_s9 = scalar_lea.vmem %s1098_s2, 16  ;;  %p702_p7 = scmp.lt.s32.totalorder %s1098_s2, %s1032_s14 }
  0xaf   : > { %p698_p6 = scmp.ne.s32.totalorder %s1098_s2, %s697_s9  ;;  %p703_p11 = scmp.lt.s32.totalorder %s1056_s16, %s697_s9 }
  0xb1   : > { %p704_p13 = por %p703_p11, %p702_p7 }
  0xb3   : > { %p705_p0 = pnand %p704_p13, %p698_p6 }
  0xb5   : > { %708 = shalt.err (!%p705_p0)  }
  0xb6   : > { %219 = dma.hbm_to_vmem [thread:$0]  %s206_s17, 16, %s1098_s2, [#allocation3 + $0x4] }
  0xb7   : > { %s237_s28 = sadd.s32 6, %s1024_s13  ;;  %s461_s18 = sshll.u32 %s1103_s29, 4 }
  0xb8   : > { %s238_s21 = sld [smem:[#allocation5 + %s237_s28]]  ;;  %s223_s30 = scalar_lea.hbm %s1209_s1, %s461_s18 }
  0xb9   : > { %s709_s8 = scalar_lea.hbm %s223_s30, 16  ;;  %p712_p4 = scmp.lt.u32.totalorder %s223_s30, %s1209_s1 }
  0xba   : > { %p710_p2 = scmp.ne.s32.totalorder %s223_s30, %s709_s8  ;;  %p713_p9 = scmp.lt.u32.totalorder %s1047_s10, %s709_s8 }
  0xbb   : > { %p715_p12 = scmp.lt.u32.totalorder %s709_s8, %s223_s30 }
  0xbc   : > { %p714_p10 = por %p713_p9, %p712_p4 }
  0xbe   : > { %p716_p1 = por %p715_p12, %p714_p10 }
  0xc0   : > { %p717_p3 = pnand %p716_p1, %p710_p2 }
  0xc2   : > { %720 = shalt.err (!%p717_p3)  }
  0xc3   : > { %s721_s2 = scalar_lea.vmem %s234_s5, 16  ;;  %p726_p8 = scmp.lt.s32.totalorder %s234_s5, %s1032_s14 }
  0xc4   : > { %p722_p5 = scmp.ne.s32.totalorder %s234_s5, %s721_s2  ;;  %p727_p6 = scmp.lt.s32.totalorder %s1056_s16, %s721_s2 }
  0xc6   : > { %p728_p7 = por %p727_p6, %p726_p8 }
  0xc8   : > { %p729_p11 = pnand %p728_p7, %p722_p5 }
  0xca   : > { %732 = shalt.err (!%p729_p11)  }
  0xcb   : > { %236 = dma.hbm_to_vmem [thread:$0]  %s223_s30, 16, %s234_s5, [#allocation3 + $0x5] }
  0xcc   : > { %s891_s29 = smov [#allocation2 + $0x6]   ;;  %s254_s15 = sadd.s32 7, %s1024_s13 }
  0xcd   : > { %s250_s17 = sshll.u32 %s891_s29, 4  ;;  %s255_s20 = sld [smem:[#allocation5 + %s254_s15]]  ;;  %s251_s17 = int_to_ptr.vmem [resolvable:$true] %s250_s17 }
  0xce   : > { %s462_s9 = sshll.u32 %s238_s21, 4  ;;  %s892_s28 = smov [#allocation2 + $0x7]  }
  0xcf   : > { %s267_s18 = sshll.u32 %s892_s28, 4  ;;  %s240_s8 = scalar_lea.hbm %s1209_s1, %s462_s9  ;;  %s268_s18 = int_to_ptr.vmem [resolvable:$true] %s267_s18 }
  0xd0   : > { %s733_s26 = scalar_lea.hbm %s240_s8, 16  ;;  %p736_p0 = scmp.lt.u32.totalorder %s240_s8, %s1209_s1 }
  0xd1   : > { %p734_p13 = scmp.ne.s32.totalorder %s240_s8, %s733_s26  ;;  %p737_p2 = scmp.lt.u32.totalorder %s1047_s10, %s733_s26 }
  0xd2   : > { %p739_p9 = scmp.lt.u32.totalorder %s733_s26, %s240_s8 }
  0xd3   : > { %p738_p4 = por %p737_p2, %p736_p0 }
  0xd5   : > { %p740_p10 = por %p739_p9, %p738_p4 }
  0xd7   : > { %p741_p12 = pnand %p740_p10, %p734_p13 }
  0xd9   : > { %744 = shalt.err (!%p741_p12)  }
  0xda   : > { %s745_s13 = scalar_lea.vmem %s251_s17, 16  ;;  %p750_p3 = scmp.lt.s32.totalorder %s251_s17, %s1032_s14 }
  0xdb   : > { %p746_p1 = scmp.ne.s32.totalorder %s251_s17, %s745_s13  ;;  %p751_p5 = scmp.lt.s32.totalorder %s1056_s16, %s745_s13 }
  0xdd   : > { %p752_p8 = por %p751_p5, %p750_p3 }
  0xdf   : > { %p753_p6 = pnand %p752_p8, %p746_p1 }
  0xe1   : > { %756 = shalt.err (!%p753_p6)  }
  0xe2   : > { %253 = dma.hbm_to_vmem [thread:$0]  %s240_s8, 16, %s251_s17, [#allocation3 + $0x6] }
  0xe3   : > { %s463_s5 = sshll.u32 %s255_s20, 4 }
  0xe4   : > { %s257_s29 = scalar_lea.hbm %s1209_s1, %s463_s5 }
  0xe5   : > { %s757_s15 = scalar_lea.hbm %s257_s29, 16  ;;  %p760_p11 = scmp.lt.u32.totalorder %s257_s29, %s1209_s1 }
  0xe6   : > { %p758_p7 = scmp.ne.s32.totalorder %s257_s29, %s757_s15  ;;  %p761_p13 = scmp.lt.u32.totalorder %s1047_s10, %s757_s15 }
  0xe7   : > { %p763_p2 = scmp.lt.u32.totalorder %s757_s15, %s257_s29 }
  0xe8   : > { %p762_p0 = por %p761_p13, %p760_p11 }
  0xea   : > { %p764_p4 = por %p763_p2, %p762_p0 }
  0xec   : > { %p765_p9 = pnand %p764_p4, %p758_p7 }
  0xee   : > { %768 = shalt.err (!%p765_p9)  }
  0xef   : > { %s769_s17 = scalar_lea.vmem %s268_s18, 16  ;;  %p774_p12 = scmp.lt.s32.totalorder %s268_s18, %s1032_s14 }
  0xf0   : > { %p770_p10 = scmp.ne.s32.totalorder %s268_s18, %s769_s17  ;;  %p775_p1 = scmp.lt.s32.totalorder %s1056_s16, %s769_s17 }
  0xf2   : > { %p776_p3 = por %p775_p1, %p774_p12 }
  0xf4   : > { %p777_p5 = pnand %p776_p3, %p770_p10 }
  0xf6   : > { %780 = shalt.err (!%p777_p5)  }
  0xf7   : > { %270 = dma.hbm_to_vmem [thread:$0]  %s257_s29, 16, %s268_s18, [#allocation3 + $0x7] }
  0xf8   : > { %s134_s20 = scalar_lea.vmem [#allocation9], %s1028_s11 }
  0xf9   : > { %839 = dma.done.wait [#allocation3], 16 }
  0xfa   : > { %840 = vsyncadd [#allocation3], 4294967280 }
  0xfb   : > { %841 = dma.done.wait [#allocation3 + $0x1], 16 }
  0xfc   : > { %842 = vsyncadd [#allocation3 + $0x1], 4294967280 }
  0xfd   : > { %843 = dma.done.wait [#allocation3 + $0x2], 16 }
  0xfe   : > { %844 = vsyncadd [#allocation3 + $0x2], 4294967280 }
  0xff   : > { %845 = dma.done.wait [#allocation3 + $0x3], 16 }
 0x100   : > { %846 = vsyncadd [#allocation3 + $0x3], 4294967280 }
 0x101   : > { %847 = dma.done.wait [#allocation3 + $0x4], 16 }
 0x102   : > { %848 = vsyncadd [#allocation3 + $0x4], 4294967280 }
 0x103   : > { %849 = dma.done.wait [#allocation3 + $0x5], 16 }
 0x104   : > { %850 = vsyncadd [#allocation3 + $0x5], 4294967280 }
 0x105   : > { %851 = dma.done.wait [#allocation3 + $0x6], 16 }
 0x106   : > { %852 = vsyncadd [#allocation3 + $0x6], 4294967280 }
 0x107   : > { %853 = dma.done.wait [#allocation3 + $0x7], 16 }
 0x108   : > { %854 = vsyncadd [#allocation3 + $0x7], 4294967280  ;;  %s465_s10 = sshll.u32 %s873_s25, 7  ;;  %s307_s11 = sshll.u32 %s134_s20, 4  ;;  %v288_v0 = vld [vmem:[#allocation2] sm:$0xff]  ;;  %v289_v1 = vld [vmem:[#allocation6] sm:$0xff]  ;;  %s1161_s11 = int_to_ptr.vmem [resolvable:$true] %s307_s11 }
 0x109   : > { %v290_v2 = vadd.f32 %v289_v1, %v288_v0  ;;  %s1159_s18 = scalar_lea.hbm %s1211_s3, %s465_s10  ;;  %s1230_s0 = sand.u32 1, %s865_s23  }
 0x10a   : > { %s293_s19 = scalar_lea.sflag [#allocation8], %s1230_s0  ;;  %s781_s8 = scalar_lea.vmem %s1161_s11, 128 }
 0x10b   : > { %291 = vst [vmem:[%s134_s20] sm:$0xff] %v290_v2  ;;  %p782_p8 = scmp.ne.s32.totalorder %s1161_s11, %s781_s8  ;;  %p1231_p6 = scmp.ne.s32.totalorder %s1222_s4, 0 }
 0x10c   : > { %s893_s25 = smov [#allocation9]  }
 0x10d   : > { %p783_p7 = pnand %p782_p8, %p1231_p6  ;;  %s785_s26 = sshll.u32 %s893_s25, 4  ;;  %s786_s26 = int_to_ptr.vmem [resolvable:$false] %s785_s26 }
 0x10e   : > { %s787_s12 = scalar_lea.vmem %s786_s26, 256  ;;  %p788_p13 = scmp.lt.s32.totalorder %s1161_s11, %s786_s26 }
 0x10f   : > { %p784_p11 = pneg %p783_p7  ;;  %p789_p0 = scmp.lt.s32.totalorder %s787_s12, %s781_s8 }
 0x111   : > { %p790_p2 = por %p789_p0, %p788_p13 }
 0x113   : > { %p791_p4 = pnand %p790_p2, %p784_p11 }
 0x115   : > { %794 = shalt.err (!%p791_p4)
}
 0x116   : > { %s795_s2 = scalar_lea.hbm %s1159_s18, 128  ;;  %s799_s21 = scalar_lea.hbm %s1211_s3, 256 }
 0x117   : > { %p796_p9 = scmp.ne.s32.totalorder %s1159_s18, %s795_s2  ;;  %p800_p1 = scmp.lt.u32.totalorder %s1159_s18, %s1211_s3 }
 0x118   : > { %p801_p3 = scmp.lt.u32.totalorder %s799_s21, %s795_s2  ;;  %p803_p8 = scmp.lt.u32.totalorder %s795_s2, %s1159_s18 }
 0x119   : > { %p797_p10 = pnand %p796_p9, %p1231_p6 }
 0x11a   : > { %p802_p5 = por %p801_p3, %p800_p1 }
 0x11b   : > { %p798_p12 = pneg %p797_p10 }
 0x11c   : > { %p804_p7 = por %p803_p8, %p802_p5 }
 0x11e   : > { %p805_p11 = pnand %p804_p7, %p798_p12 }
 0x120   : > { %808 = shalt.err (!%p805_p11)
}
 0x121   : > { %480 = dma.vmem_to_hbm [thread:$0]  (%p1231_p6), %s1161_s11, 128, %s1159_s18, %s293_s19  }
 0x122 PF: > { %p492_p13 = scmp.ge.s32.totalorder %s881_s27, 2  ;;  %s319_s15 = sand.u32 1, %s861_s22  }
 0x123   : > { %p1232_p0 = scmp.ne.s32.totalorder %s1223_s6, 0  ;;  %s320_s9 = scalar_lea.sflag [#allocation8], %s319_s15 }
 0x125   : > { %p487_p2 = pnand %p492_p13, %p1232_p0 }
 0x127   : > { %856 = dma.done.wait (!%p487_p2), %s320_s9, 128  }
 0x128   : > { %858 = vsyncadd (!%p487_p2), %s320_s9, 4294967168  ;;  %s21_s27 = sadd.s32 1, %s881_s27   ;;  %s1233_s25 = sld [smem:[#allocation39_spill]] }
 0x129   : > { %p18_p4 = scmp.ge.s32.totalorder %s21_s27, 4   ;;  %s1234_s26 = sld [smem:[#allocation40_spill]] }
 0x12a   : > { %s1235_s22 = smov %s865_s23  ;;  %s1236_s23 = smov %s869_s24 }
 0x12b   : > { %s1237_s24 = smov %s979_s7  ;;  %20 = sbr.rel (!%p18_p4) target bundleno = 17 (0x11), region = 123 }
 0x132   :  { %325 = vsyncpa [#allocation7], 1 }
 0x133   :  { %327 = vsyncpa [#allocation7 + $0x1], 1 }
 0x134   :  { %328 = vsyncpa [#allocation8], 1 }
 0x135   :  { %330 = vsyncpa [#allocation8 + $0x1], 1 }
 0x136   :  { %331 = vsyncmov [#allocation3] }
 0x139   :  { %s332_s4 = vpop.sfrf %331 }
 0x13a   :  { %p468_p6 = scmp.ne.s32.totalorder %s332_s4, 0 }
 0x13c   :  { %336 = shalt.err (%p468_p6)  }
 0x13d   :  { %338 = vsyncmov [#allocation3 + $0x1] }
 0x140   :  { %s339_s6 = vpop.sfrf %338 }
 0x141   :  { %p469_p9 = scmp.ne.s32.totalorder %s339_s6, 0 }
 0x143   :  { %343 = shalt.err (%p469_p9)  }
 0x144   :  { %345 = vsyncmov [#allocation3 + $0x2] }
 0x147   :  { %s346_s7 = vpop.sfrf %345 }
 0x148   :  { %p470_p10 = scmp.ne.s32.totalorder %s346_s7, 0 }
 0x14a   :  { %350 = shalt.err (%p470_p10)  }
 0x14b   :  { %352 = vsyncmov [#allocation3 + $0x3] }
 0x14e   :  { %s353_s28 = vpop.sfrf %352 }
 0x14f   :  { %p471_p12 = scmp.ne.s32.totalorder %s353_s28, 0 }
 0x151   :  { %357 = shalt.err (%p471_p12)  }
 0x152   :  { %359 = vsyncmov [#allocation3 + $0x4] }
 0x155   :  { %s360_s1 = vpop.sfrf %359 }
 0x156   :  { %p472_p1 = scmp.ne.s32.totalorder %s360_s1, 0 }
 0x158   :  { %364 = shalt.err (%p472_p1)  }
 0x159   :  { %366 = vsyncmov [#allocation3 + $0x5] }
 0x15c   :  { %s367_s3 = vpop.sfrf %366 }
 0x15d   :  { %p473_p3 = scmp.ne.s32.totalorder %s367_s3, 0 }
 0x15f   :  { %371 = shalt.err (%p473_p3)  }
 0x160   :  { %373 = vsyncmov [#allocation3 + $0x6] }
 0x163   :  { %s374_s22 = vpop.sfrf %373 }
 0x164   :  { %p474_p5 = scmp.ne.s32.totalorder %s374_s22, 0 }
 0x166   :  { %378 = shalt.err (%p474_p5)  }
 0x167   :  { %380 = vsyncmov [#allocation3 + $0x7] }
 0x16a   :  { %s381_s23 = vpop.sfrf %380 }
 0x16b   :  { %p475_p8 = scmp.ne.s32.totalorder %s381_s23, 0 }
 0x16d   :  { %385 = shalt.err (%p475_p8)  }

</bundles_post_ra>
